<compile_context>
chip_gen: v7x
topology: tpu7x:2x2x1
jax: 0.10.0
libtpu: 0.0.40
codegen_flags: <defaults>
</compile_context>

<pallas_src>
import jax
import jax.numpy as jnp
from jax.experimental import pallas as pl
from jax.experimental.pallas import tpu as pltpu

IN_FEATURES = 10
OUT_FEATURES = 2

# Max rows per grid step.  A [tb, 10] f32 tile is lane-padded to 128 in VMEM
# (tb * 512 B), as is the [tb, 2] output tile; with double buffering the total
# footprint at tb = 8192 is ~16 MiB -> safe under the 32 MiB scoped limit set
# below on all of v5e / v6e / v7x, while keeping per-step DMA (~4 MiB) large
# enough to amortize the ~0.35 us per-step overhead.
TB_MAX = 8192
_ALIGN = 8  # sublane granularity (f32 rows per (8,128) tile)


def _round_up(n, m):
    return ((n + m - 1) // m) * m


def linear_kernel(x_ref, wt_ref, b_ref, o_ref):
    """y = x @ w.T + b for one batch tile.

    x_ref:  [tb, IN]   f32 VMEM tile (natural PyTorch layout).
    wt_ref: [IN, OUT]  f32 VMEM (w transposed once in the wrapper; resident).
    b_ref:  [1, OUT]   f32 VMEM (resident).
    o_ref:  [tb, OUT]  f32 VMEM tile.
    """
    # One MXU matmul per tile (K=10, N=2 is tiny, but the MXU is completely
    # idle otherwise and this keeps the VPU/VALU slots off the critical path),
    # one broadcast bias add, one full-tile store.
    o_ref[...] = (
        jnp.dot(x_ref[...], wt_ref[...], preferred_element_type=jnp.float32)
        + b_ref[...]
    ).astype(o_ref.dtype)


def _choose_tiling(batch):
    """Return (padded_batch, tile_rows, n_tiles)."""
    if batch <= 512:
        # Tiny batch: a single block equal to the full array is always
        # layout-legal -> no padding, no slicing, one grid step.
        return batch, batch, 1
    padded = _round_up(batch, _ALIGN)
    # >= 2 tiles so ("parallel",) can shard the grid across v7x's two
    # TensorCores; more tiles once the batch exceeds TB_MAX rows.
    n = max(pl.cdiv(padded, TB_MAX), 2)
    tb = _round_up(pl.cdiv(padded, n), _ALIGN)
    n = pl.cdiv(padded, tb)
    return n * tb, tb, n


def mock_model_forward(x, w, b):
    """Equivalent of torch.nn.Linear(10, 2): y = x @ w.T + b.

    x: [batch, 10] f32, w: [2, 10] f32 (PyTorch layout), b: [2] f32.
    Returns y: [batch, 2] f32.
    """
    batch = x.shape[0]
    wt = jnp.transpose(w)                    # [IN, OUT] — 40 bytes, negligible
    b2 = jnp.reshape(b, (1, OUT_FEATURES))   # 2-D so it can live in VMEM

    padded, tb, n_tiles = _choose_tiling(batch)
    x_in = x if padded == batch else jnp.pad(x, ((0, padded - batch), (0, 0)))

    y = pl.pallas_call(
        linear_kernel,
        out_shape=jax.ShapeDtypeStruct((padded, OUT_FEATURES), x.dtype),
        grid=(n_tiles,),
        in_specs=[
            # x tile: batch (sublane) axis tiled, feature axis whole
            # (10 == full last dim, so the (8,128) rule is satisfied).
            pl.BlockSpec((tb, IN_FEATURES), lambda i: (i, 0)),
            # Tiny params: constant block index -> stay resident in VMEM.
            pl.BlockSpec((IN_FEATURES, OUT_FEATURES), lambda i: (0, 0)),
            pl.BlockSpec((1, OUT_FEATURES), lambda i: (0, 0)),
        ],
        out_specs=pl.BlockSpec((tb, OUT_FEATURES), lambda i: (i, 0)),
        compiler_params=pltpu.CompilerParams(
            # No reduction axis -> "parallel"; lets v7x shard across its 2 TCs.
            dimension_semantics=("parallel",),
            vmem_limit_bytes=32 * 1024 * 1024,
        ),
        cost_estimate=pl.CostEstimate(
            flops=2 * padded * IN_FEATURES * OUT_FEATURES,
            transcendentals=0,
            bytes_accessed=(padded * (IN_FEATURES + OUT_FEATURES) * 4
                            + IN_FEATURES * OUT_FEATURES * 4
                            + OUT_FEATURES * 4),
        ),
    )(x_in, wt, b2)

    return y if padded == batch else y[:batch]


if __name__ == "__main__":
    key = jax.random.PRNGKey(0)
    k_x, k_w, k_b = jax.random.split(key, 3)

    batch = 2
    x = jax.random.normal(k_x, (batch, IN_FEATURES), dtype=jnp.float32)

    # PyTorch-style init: uniform(-1/sqrt(in), 1/sqrt(in)); weight is [out, in].
    bound = 1.0 / float(IN_FEATURES) ** 0.5
    w = jax.random.uniform(k_w, (OUT_FEATURES, IN_FEATURES), dtype=jnp.float32,
                           minval=-bound, maxval=bound)
    b = jax.random.uniform(k_b, (OUT_FEATURES,), dtype=jnp.float32,
                           minval=-bound, maxval=bound)

    y = mock_model_forward(x, w, b)
    jax.block_until_ready(y)

    y_ref = x @ w.T + b
    assert y.shape == (batch, OUT_FEATURES)
    assert jnp.allclose(y, y_ref, atol=1e-5, rtol=1e-5)

    print("KERNEL_OK")
</pallas_src>

<mosaic_0001>
module attributes {stable_mosaic.version = 11 : i64} {
  func.func @linear_kernel(%arg0: i32, %arg1: memref<2x10xf32, #tpu.memory_space<vmem>>, %arg2: memref<10x2xf32, #tpu.memory_space<vmem>>, %arg3: memref<1x2xf32, #tpu.memory_space<vmem>>, %arg4: memref<2x2xf32, #tpu.memory_space<vmem>>) attributes {dimension_semantics = [#tpu.dimension_semantics<parallel>], iteration_bounds = array<i64: 1>, scalar_prefetch = 0 : i64, scratch_operands = 0 : i64, tpu.core_type = #tpu.core_type<tc>, window_params = [{transform_indices = @transform_0, window_bounds = array<i64: 2, 10>}, {pipeline_mode = #tpu.pipeline_mode<synchronous>, transform_indices = @transform_1, window_bounds = array<i64: 10, 2>}, {pipeline_mode = #tpu.pipeline_mode<synchronous>, transform_indices = @transform_2, window_bounds = array<i64: 1, 2>}, {transform_indices = @transform_3, window_bounds = array<i64: 2, 2>}]} {
    %c0 = arith.constant 0 : index
    %c0_0 = arith.constant 0 : index
    %0 = vector.load %arg1[%c0, %c0_0] : memref<2x10xf32, #tpu.memory_space<vmem>>, vector<2x10xf32>
    %c0_1 = arith.constant 0 : index
    %c0_2 = arith.constant 0 : index
    %1 = vector.load %arg2[%c0_1, %c0_2] : memref<10x2xf32, #tpu.memory_space<vmem>>, vector<10x2xf32>
    %cst = arith.constant dense<0.000000e+00> : vector<2x2xf32>
    %2 = tpu.matmul %0, %1, %cst {dimension_numbers = #tpu.dot_dimension_numbers<[1], [0], [0], [1], [0, 0, 1, 1], [], []>} : vector<2x10xf32>, vector<10x2xf32>, vector<2x2xf32> -> vector<2x2xf32>
    %c0_3 = arith.constant 0 : index
    %c0_4 = arith.constant 0 : index
    %3 = vector.load %arg3[%c0_3, %c0_4] : memref<1x2xf32, #tpu.memory_space<vmem>>, vector<1x2xf32>
    %4 = vector.broadcast %3 : vector<1x2xf32> to vector<2x2xf32>
    %5 = arith.addf %2, %4 : vector<2x2xf32>
    %c0_5 = arith.constant 0 : index
    %c0_6 = arith.constant 0 : index
    %6 = vector.load %arg4[%c0_5, %c0_6] : memref<2x2xf32, #tpu.memory_space<vmem>>, vector<2x2xf32>
    tpu.vector_store %arg4[%c0_5, %c0_6], %5 {strides = array<i32>} : memref<2x2xf32, #tpu.memory_space<vmem>>, vector<2x2xf32>,
    return
  }
  func.func @transform_0(%arg0: i32) -> (i32, i32) {
    %c0_i32 = arith.constant 0 : i32
    %c0_i32_0 = arith.constant 0 : i32
    return %arg0, %c0_i32 : i32, i32
  }
  func.func @transform_1(%arg0: i32) -> (i32, i32) {
    %c0_i32 = arith.constant 0 : i32
    %c0_i32_0 = arith.constant 0 : i32
    %c0_i32_1 = arith.constant 0 : i32
    return %c0_i32, %c0_i32_0 : i32, i32
  }
  func.func @transform_2(%arg0: i32) -> (i32, i32) {
    %c0_i32 = arith.constant 0 : i32
    %c0_i32_0 = arith.constant 0 : i32
    %c0_i32_1 = arith.constant 0 : i32
    return %c0_i32, %c0_i32_0 : i32, i32
  }
  func.func @transform_3(%arg0: i32) -> (i32, i32) {
    %c0_i32 = arith.constant 0 : i32
    %c0_i32_0 = arith.constant 0 : i32
    return %arg0, %c0_i32 : i32, i32
  }
}

</mosaic_0001>

<bundles_post_ra>
// kernel: tpu_custom_call.1
= control target key start
LH: loop header
LB: loop body
LE: loop exit
PB: predicated region body
PF: predicated region fallthrough
CT: control target
= control target key end

     0   :  { %vm29_vm0 = vcmask 1041408   ;;  %v165_v2 = vmov 0.0|0.0   ;;  %vm166_vm1 = vmmov 1   ;;  %vm167_vm3 = vmmov 0   ;;  %s214_s0 = inlined_call_operand.vmem [shape: f32[2,10], index: 0, kind: input, shape index: {}]   ;;  %s215_s1 = inlined_call_operand.vmem [shape: f32[10,2], index: 1, kind: input, shape index: {}]   ;;  %s216_s2 = inlined_call_operand.vmem [shape: f32[1,2], index: 2, kind: input, shape index: {}]   ;;  %s217_s3 = inlined_call_operand.hbm [shape: f32[2,2], index: 3, kind: output, shape index: {}]  }
   0x1   :  { %v16_v0 = vld [vmem:[%s215_s1] sm:$0xff]  ;;  %v17_v1 = vld [vmem:[%s215_s1 + $0x8] sm:$0x3]  ;;  %132 = vmatprep.subr.bf16.mxu0 %v165_v2  ;;  %vm134_vm2 = vmpackc.low %vm29_vm0, %vm166_vm1  ;;  %v168_v4 = vmov 0.0  }
   0x2   :  { %v133_v3 = vpack.c.bf16 %v17_v1, %v16_v0  ;;  %129 = vmatprep.mubr.msk.f32.mxu0 %vm167_vm3, %v168_v4 }
   0x3   :  { %8 = vsyncpa [#allocation3], 0  ;;  %v15_v5 = vld [vmem:[%s214_s0] sm:$0x3]  ;;  %vm25_vm4 = vcmask 80896   ;;  %s169_s1 = smov [#allocation2]  }
   0x4   :  { %135 = vmatpush3.bf16.msk.msra.mxu0 %vm134_vm2, %v133_v3  ;;  %v119_v6 = vld [vmem:[%s216_s2] ss:$0 sm:$0xff]  ;;  %s111_s20 = sshll.u32 %s169_s1, 4  ;;  %vm103_vm5 = vcmask 9216   ;;  %s112_s20 = int_to_ptr.vmem [resolvable:$true] %s111_s20 }
   0x5   :  { %s141_s21 = scalar_lea.vmem %s112_s20, 32  ;;  %p146_p1 = scmp.lt.s32.totalorder %s112_s20, %s112_s20 }
   0x6   :  { %p142_p0 = scmp.ne.s32.totalorder %s112_s20, %s141_s21  ;;  %p147_p2 = scmp.lt.s32.totalorder %s141_s21, %s141_s21 }
   0x7   :  { %130 = vmatmul.mubr.msk.f32.vlgmr.msra.gmra.mrb[0].mxu0 %vm25_vm4, %v15_v5 }
   0x8   :  { %p148_p3 = por %p147_p2, %p146_p1 }
   0xa   :  { %p149_p4 = pnand %p148_p3, %p142_p0 }
  0xda   :  { %v99_v7 = vpop.f32.mrb[0].mxu0 }
  0xdb   :  { %v100_v8 = vadd.f32 %v119_v6, %v99_v7  ;;  %v131_v9 = vpop.f32.mrb[1].mxu0 }
  0xdd   :  { %104 = vst.msk [vmem:[#allocation2] sm:$0x3] %vm103_vm5, %v100_v8 }
  0xde   :  { %152 = shalt.err (!%p149_p4)
}
  0xdf   :  { %s153_s23 = scalar_lea.hbm %s217_s3, 32 }
  0xe0   :  { %p154_p5 = scmp.ne.s32.totalorder %s217_s3, %s153_s23  ;;  %p157_p6 = scmp.lt.u32.totalorder %s153_s23, %s217_s3 }
  0xe2   :  { %p159_p7 = pnand %p157_p6, %p154_p5 }
  0xe4   :  { %162 = shalt.err (!%p159_p7)
}
  0xe5   :  { %114 = dma.vmem_to_hbm [thread:$0]  %s112_s20, 32, %s217_s3, [#allocation3]  }
  0xe6   :  { %163 = dma.done.wait [#allocation3], 32  }
  0xe7   :  { %164 = vsyncadd [#allocation3], 4294967264 }
  0xe8   :  { %118 = vsyncpa [#allocation3], 1 }

</bundles_post_ra>
